<compile_context>
chip_gen: v7x
topology: tpu7x:2x2x1
jax: 0.10.0
libtpu: 0.0.40
codegen_flags: <defaults>
</compile_context>

<pallas_src>
import functools

import jax
import jax.numpy as jnp
from jax import lax
from jax.experimental import pallas as pl
from jax.experimental.pallas import tpu as pltpu

LANES = 512                          # lane-dense last dim (multiple of 128)
SUBLANES = 8                         # f32 sublane tile; partial-sum shape (8, LANES)
ROW_ALIGN = 32                       # block-row alignment (covers f32/bf16/int8 packing)
TARGET_BLOCK_BYTES = 2 * 1024 * 1024  # HBM bytes moved per input per grid step


def _cdiv(a, b):
    return -(-a // b)


def _round_up(a, b):
    return _cdiv(a, b) * b


@functools.lru_cache(maxsize=None)
def _detect_num_splits() -> int:
    """2 on dual-TensorCore chips (v7x / megacore), 1 on single-TC v5e/v6e."""
    try:
        kind = jax.devices()[0].device_kind.lower()
    except Exception:
        return 2
    if any(tag in kind for tag in ("v5e", "v5 lite", "v6e", "v6 lite", "lite")):
        return 1
    return 2


def _l1_partial_kernel(a_ref, b_ref, out_ref, *, rows, steps, block_rows):
    """Accumulate sum(|a - b|) of this split into a resident (8, LANES) f32
    output block; ragged / overshooting blocks are masked by row index."""
    c = pl.program_id(0)
    i = pl.program_id(1)

    @pl.when(i == 0)
    def _init():
        out_ref[...] = jnp.zeros_like(out_ref)

    # Global row offset this step would cover.  The index_map clamps the DMA to
    # stay in bounds; n_valid <= 0 makes any over-shot block contribute zero.
    row0 = (c * steps + i) * block_rows
    n_valid = rows - row0

    def _block_l1(mask):
        a = a_ref[...].astype(jnp.float32)
        b = b_ref[...].astype(jnp.float32)
        d = jnp.abs(a - b)
        if mask:
            rid = lax.broadcasted_iota(jnp.int32, d.shape, 0)
            d = jnp.where(rid < n_valid, d, 0.0)
        # Layout-preserving reshape, then pure VALU vreg adds into (8, LANES).
        return d.reshape(block_rows // SUBLANES, SUBLANES, -1).sum(axis=0)

    @pl.when(n_valid >= block_rows)            # hot path: full block, no masking
    def _full():
        out_ref[...] += _block_l1(mask=False)

    @pl.when(n_valid < block_rows)             # ragged tail (at most one block)
    def _masked():
        out_ref[...] += _block_l1(mask=True)


@jax.jit
def _l1_loss_pallas(deblurred, target):
    assert deblurred.shape == target.shape, "deblurred and target must match"
    total = 1
    for s in deblurred.shape:
        total *= int(s)
    assert total > 0

    a = deblurred.reshape(-1)   # free bitcast
    b = target.reshape(-1)

    tail = total % LANES
    if tail:
        # TODO(synk): ragged element count -- pad by < LANES zeros (they cancel
        # in |a-b|).  allow_input_fusion lets XLA fold the pad into the kernel's
        # input reads when possible; multiples of 512 take the copy-free path.
        pad = LANES - tail
        a = jnp.pad(a, (0, pad))
        b = jnp.pad(b, (0, pad))
        allow_fusion = [True, True]
    else:
        allow_fusion = None

    rows = _cdiv(total, LANES)
    a2 = a.reshape(rows, LANES)
    b2 = b.reshape(rows, LANES)

    itemsize = max(a2.dtype.itemsize, b2.dtype.itemsize)
    max_rows = max(ROW_ALIGN, TARGET_BLOCK_BYTES // (LANES * itemsize))
    block_rows = min(max_rows, _round_up(rows, ROW_ALIGN))

    num_splits = _detect_num_splits()
    n_blocks = _cdiv(rows, block_rows)
    steps = _cdiv(n_blocks, num_splits)

    def in_map(c, i):
        # Clamp so the DMA never starts past the last block; the kernel's row
        # masking zeroes any contribution from clamped / partial blocks.
        return (jnp.minimum(c * steps + i, n_blocks - 1), 0)

    kernel = functools.partial(
        _l1_partial_kernel, rows=rows, steps=steps, block_rows=block_rows)

    partials = pl.pallas_call(
        kernel,
        out_shape=jax.ShapeDtypeStruct((num_splits * SUBLANES, LANES), jnp.float32),
        grid_spec=pltpu.PrefetchScalarGridSpec(
            num_scalar_prefetch=0,
            grid=(num_splits, steps),
            in_specs=[
                pl.BlockSpec((block_rows, LANES), in_map),
                pl.BlockSpec((block_rows, LANES), in_map),
            ],
            out_specs=pl.BlockSpec((SUBLANES, LANES), lambda c, i: (c, 0)),
        ),
        compiler_params=pltpu.CompilerParams(
            dimension_semantics=("parallel", "arbitrary"),
            vmem_limit_bytes=32 * 1024 * 1024,
            allow_input_fusion=allow_fusion,
        ),
    )(a2, b2)

    # Tiny final reduction + division by the TRUE element count.
    return jnp.sum(partials) / jnp.float32(total)


class FixedDeblurLossPallas:
    """JAX/Pallas equivalent of FixedDeblurLoss (parameter-free).

    The dict's 'recon_loss' entry is the same device scalar (no forced
    device->host sync per call; convert with float(...) at logging time).
    """

    def __call__(self, deblurred, target):
        recon_loss = _l1_loss_pallas(deblurred, target)
        return recon_loss, {
            "recon_loss": recon_loss,
            "motion_smooth_loss": 0.0,
            "temporal_loss": 0.0,
        }


if __name__ == "__main__":
    key = jax.random.PRNGKey(0)
    k1, k2, k3, k4 = jax.random.split(key, 4)

    # batch=2, channels=4, spatial=16x16  (total=2048: copy-free path, masked block)
    deblurred = jax.random.normal(k1, (2, 4, 16, 16), dtype=jnp.float32)
    target = jax.random.normal(k2, (2, 4, 16, 16), dtype=jnp.float32)

    loss_mod = FixedDeblurLossPallas()
    recon_loss, loss_dict = loss_mod(deblurred, target)
    recon_loss = jax.block_until_ready(recon_loss)

    ref = jnp.mean(jnp.abs(deblurred - target))
    assert jnp.allclose(recon_loss, ref, rtol=1e-5, atol=1e-6), (recon_loss, ref)
    assert loss_dict["motion_smooth_loss"] == 0.0
    assert loss_dict["temporal_loss"] == 0.0

    # odd bf16 shape: ragged-tail (pad) path + bf16 sublane packing
    x = jax.random.normal(k3, (3, 3, 17, 19), dtype=jnp.bfloat16)
    y = jax.random.normal(k4, (3, 3, 17, 19), dtype=jnp.bfloat16)
    got = jax.block_until_ready(_l1_loss_pallas(x, y))
    ref2 = jnp.mean(jnp.abs(x.astype(jnp.float32) - y.astype(jnp.float32)))
    assert jnp.allclose(got, ref2, rtol=1e-3, atol=1e-4), (got, ref2)

    # multi-row f32 shape, copy-free, rows not a multiple of the block (masked)
    k5, k6 = jax.random.split(k3)
    u = jax.random.normal(k5, (3, 5, 32, 32), dtype=jnp.float32)
    v = jax.random.normal(k6, (3, 5, 32, 32), dtype=jnp.float32)
    got2 = jax.block_until_ready(_l1_loss_pallas(u, v))
    ref3 = jnp.mean(jnp.abs(u - v))
    assert jnp.allclose(got2, ref3, rtol=1e-5, atol=1e-6), (got2, ref3)

    print("KERNEL_OK")
</pallas_src>

<mosaic_0001>
module attributes {stable_mosaic.version = 11 : i64} {
  func.func @_l1_partial_kernel(%arg0: i32, %arg1: i32, %arg2: memref<32x512xf32, #tpu.memory_space<vmem>>, %arg3: memref<32x512xf32, #tpu.memory_space<vmem>>, %arg4: memref<8x512xf32, #tpu.memory_space<vmem>>) attributes {dimension_semantics = [#tpu.dimension_semantics<parallel>, #tpu.dimension_semantics<arbitrary>], iteration_bounds = array<i64: 2, 1>, scalar_prefetch = 0 : i64, scratch_operands = 0 : i64, tpu.core_type = #tpu.core_type<tc>, window_params = [{transform_indices = @transform_0, window_bounds = array<i64: 32, 512>}, {transform_indices = @transform_1, window_bounds = array<i64: 32, 512>}, {transform_indices = @transform_2, window_bounds = array<i64: 8, 512>}]} {
    %c0_i32 = arith.constant 0 : i32
    %0 = arith.cmpi eq, %arg1, %c0_i32 : i32
    %1 = arith.extui %0 : i1 to i32
    %c0_i32_0 = arith.constant 0 : i32
    %2 = arith.cmpi ne, %1, %c0_i32_0 : i32
    scf.if %2 {
      %cst = arith.constant 0.000000e+00 : f32
      %13 = vector.broadcast %cst : f32 to vector<8x512xf32>
      %c0 = arith.constant 0 : index
      %c0_5 = arith.constant 0 : index
      %14 = vector.load %arg4[%c0, %c0_5] : memref<8x512xf32, #tpu.memory_space<vmem>>, vector<8x512xf32>
      tpu.vector_store %arg4[%c0, %c0_5], %13 {strides = array<i32>} : memref<8x512xf32, #tpu.memory_space<vmem>>, vector<8x512xf32>,
    } else {
    }
    %c1_i32 = arith.constant 1 : i32
    %3 = arith.muli %arg0, %c1_i32 : i32
    %4 = arith.addi %3, %arg1 : i32
    %c32_i32 = arith.constant 32 : i32
    %5 = arith.muli %4, %c32_i32 : i32
    %c4_i32 = arith.constant 4 : i32
    %6 = arith.subi %c4_i32, %5 : i32
    %c32_i32_1 = arith.constant 32 : i32
    %7 = arith.cmpi sge, %6, %c32_i32_1 : i32
    %8 = arith.extui %7 : i1 to i32
    %c0_i32_2 = arith.constant 0 : i32
    %9 = arith.cmpi ne, %8, %c0_i32_2 : i32
    scf.if %9 {
      %c0 = arith.constant 0 : index
      %c0_5 = arith.constant 0 : index
      %13 = vector.load %arg4[%c0, %c0_5] : memref<8x512xf32, #tpu.memory_space<vmem>>, vector<8x512xf32>
      %c0_6 = arith.constant 0 : index
      %c0_7 = arith.constant 0 : index
      %14 = vector.load %arg2[%c0_6, %c0_7] : memref<32x512xf32, #tpu.memory_space<vmem>>, vector<32x512xf32>
      %c0_8 = arith.constant 0 : index
      %c0_9 = arith.constant 0 : index
      %15 = vector.load %arg3[%c0_8, %c0_9] : memref<32x512xf32, #tpu.memory_space<vmem>>, vector<32x512xf32>
      %16 = arith.subf %14, %15 : vector<32x512xf32>
      %17 = math.absf %16 : vector<32x512xf32>
      %18 = vector.shape_cast %17 : vector<32x512xf32> to vector<4x8x512xf32>
      %cst = arith.constant dense<0.000000e+00> : vector<8x512xf32>
      %19 = vector.multi_reduction <add>, %18, %cst [0] : vector<4x8x512xf32> to vector<8x512xf32>
      %20 = arith.addf %13, %19 : vector<8x512xf32>
      %c0_10 = arith.constant 0 : index
      %c0_11 = arith.constant 0 : index
      %21 = vector.load %arg4[%c0_10, %c0_11] : memref<8x512xf32, #tpu.memory_space<vmem>>, vector<8x512xf32>
      tpu.vector_store %arg4[%c0_10, %c0_11], %20 {strides = array<i32>} : memref<8x512xf32, #tpu.memory_space<vmem>>, vector<8x512xf32>,
    } else {
    }
    %c32_i32_3 = arith.constant 32 : i32
    %10 = arith.cmpi slt, %6, %c32_i32_3 : i32
    %11 = arith.extui %10 : i1 to i32
    %c0_i32_4 = arith.constant 0 : i32
    %12 = arith.cmpi ne, %11, %c0_i32_4 : i32
    scf.if %12 {
      %c0 = arith.constant 0 : index
      %c0_5 = arith.constant 0 : index
      %13 = vector.load %arg4[%c0, %c0_5] : memref<8x512xf32, #tpu.memory_space<vmem>>, vector<8x512xf32>
      %c0_6 = arith.constant 0 : index
      %c0_7 = arith.constant 0 : index
      %14 = vector.load %arg2[%c0_6, %c0_7] : memref<32x512xf32, #tpu.memory_space<vmem>>, vector<32x512xf32>
      %c0_8 = arith.constant 0 : index
      %c0_9 = arith.constant 0 : index
      %15 = vector.load %arg3[%c0_8, %c0_9] : memref<32x512xf32, #tpu.memory_space<vmem>>, vector<32x512xf32>
      %16 = arith.subf %14, %15 : vector<32x512xf32>
      %17 = math.absf %16 : vector<32x512xf32>
      %18 = tpu.iota {dimensions = array<i32: 0>} : vector<32x512xi32>
      %19 = vector.broadcast %6 : i32 to vector<32x512xi32>
      %20 = arith.cmpi slt, %18, %19 : vector<32x512xi32>
      %cst = arith.constant 0.000000e+00 : f32
      %21 = vector.broadcast %cst : f32 to vector<32x512xf32>
      %22 = arith.select %20, %17, %21 : vector<32x512xi1>, vector<32x512xf32>
      %23 = vector.shape_cast %22 : vector<32x512xf32> to vector<4x8x512xf32>
      %cst_10 = arith.constant dense<0.000000e+00> : vector<8x512xf32>
      %24 = vector.multi_reduction <add>, %23, %cst_10 [0] : vector<4x8x512xf32> to vector<8x512xf32>
      %25 = arith.addf %13, %24 : vector<8x512xf32>
      %c0_11 = arith.constant 0 : index
      %c0_12 = arith.constant 0 : index
      %26 = vector.load %arg4[%c0_11, %c0_12] : memref<8x512xf32, #tpu.memory_space<vmem>>, vector<8x512xf32>
      tpu.vector_store %arg4[%c0_11, %c0_12], %25 {strides = array<i32>} : memref<8x512xf32, #tpu.memory_space<vmem>>, vector<8x512xf32>,
    } else {
    }
    return
  }
  func.func @transform_0(%arg0: i32, %arg1: i32) -> (i32, i32) {
    %c1_i32 = arith.constant 1 : i32
    %0 = arith.muli %arg0, %c1_i32 : i32
    %1 = arith.addi %0, %arg1 : i32
    %c0_i32 = arith.constant 0 : i32
    %2 = arith.minsi %1, %c0_i32 : i32
    %c0_i32_0 = arith.constant 0 : i32
    %c0_i32_1 = arith.constant 0 : i32
    return %2, %c0_i32_0 : i32, i32
  }
  func.func @transform_1(%arg0: i32, %arg1: i32) -> (i32, i32) {
    %c1_i32 = arith.constant 1 : i32
    %0 = arith.muli %arg0, %c1_i32 : i32
    %1 = arith.addi %0, %arg1 : i32
    %c0_i32 = arith.constant 0 : i32
    %2 = arith.minsi %1, %c0_i32 : i32
    %c0_i32_0 = arith.constant 0 : i32
    %c0_i32_1 = arith.constant 0 : i32
    return %2, %c0_i32_0 : i32, i32
  }
  func.func @transform_2(%arg0: i32, %arg1: i32) -> (i32, i32) {
    %c0_i32 = arith.constant 0 : i32
    %c0_i32_0 = arith.constant 0 : i32
    return %arg0, %c0_i32 : i32, i32
  }
}

</mosaic_0001>

<bundles_post_ra>
// kernel: _l1_loss_pallas.1
= control target key start
LH: loop header
LB: loop body
LE: loop exit
PB: predicated region body
PF: predicated region fallthrough
CT: control target
= control target key end

     0   :  { %s736_s9 = smov 0   ;;  %s738_s10 = smov 0   ;;  %s936_s0 = inlined_call_operand.vmem [shape: f32[4,512], index: 0, kind: input, shape index: {}]   ;;  %s937_s1 = inlined_call_operand.vmem [shape: f32[4,512], index: 1, kind: input, shape index: {}]   ;;  %s938_s2 = inlined_call_operand.vmem [shape: f32[16,512], index: 2, kind: output, shape index: {}]  }
   0x1   :  { %s740_s11 = smov 0  }
   0x2 LB: > { %s24_s12 = sadd.s32 1, %s714_s10  ;;  %p654_p0 = scmp.ge.s32.totalorder %s718_s11, 1  ;;  %s718_s11 = sphi %s740_s11, %s12_s11   ;;  %s714_s10 = sphi %s738_s10, %s940_s10   ;;  %s710_s9 = sphi %s736_s9, %s939_s9  }
   0x3   : > { %p26_p1 = scmp.ge.s32.totalorder %s24_s12, 2  ;;  %p174_p2 = scmp.lt.s32.totalorder %s718_s11, 3 }
   0x5   : > { %s942_s12 = smov (%p26_p1, %s24_s12), 0  ;;  %p175_p3 = pnand %p654_p0, %p174_p2 }
   0x6   : > { %p216_p4 = scmp.lt.s32.totalorder (!%p175_p3), %s710_s9, 0  ;;  %p253_p5 = scmp.lt.s32.totalorder (!%p175_p3), %s710_s9, 1  ;;  %v720_v0 = vmov (!%p175_p3), 0.0  }
   0x7   : > { %178 = sbr.rel (%p175_p3) target bundleno = 86 (0x56), region = 28  ;;  %s663_s13 = sshll.u32 (!%p175_p3), %s710_s9, 5 }
   0x8   : > { %s754_s16 = ssub.s32 (!%p175_p3), 4, %s663_s13 }
   0x9   : > { %p664_p7 = scmp.lt.s32.totalorder (!%p175_p3), %s754_s16, 32 }
   0xe   : > { %s217_s14 = scalar_select %p216_p4, %s710_s9, 0 }
   0xf   : > { %s944_s9 = smov (!%p253_p5, %s710_s9), 1  ;;  %272 = sbr.rel (%p664_p7) target bundleno = 52 (0x34), region = 36 }
  0x10   : > { %s655_s15 = sshll.u32 %s217_s14, 3  ;;  %s670_s17 = sshll.u32 %s944_s9, 5 }
  0x11   : > { %p222_p6 = scmp.lt.s32.totalorder %s655_s15, 0  ;;  %s759_s20 = scalar_lea.vmem %s938_s2, %s670_s17 }
  0x12   : > { %262 = vst [vmem:[%s759_s20] sm:$0xff] %v720_v0  ;;  %263 = vst [vmem:[%s759_s20 + $0x8] sm:$0xff] %v720_v0 }
  0x13   : > { %s946_s15 = smov (!%p222_p6, %s655_s15), 0  ;;  %264 = vst [vmem:[%s759_s20 + $0x10] sm:$0xff] %v720_v0  ;;  %265 = vst [vmem:[%s759_s20 + $0x18] sm:$0xff] %v720_v0 }
  0x14   : > { %s668_s21 = sshll.u32 %s946_s15, 4 }
  0x15   : > { %s768_s24 = scalar_lea.vmem %s936_s0, %s668_s21  ;;  %s773_s27 = scalar_lea.vmem %s937_s1, %s668_s21 }
  0x16   : > { %v277_v1 = vld [vmem:[%s768_s24] sm:$0xff]  ;;  %v279_v2 = vld [vmem:[%s768_s24 + $0x10] sm:$0xff]  ;;  %v278_v30 = vld [vmem:[%s768_s24 + $0x8] sm:$0xff] }
  0x17   : > { %v281_v3 = vld [vmem:[%s768_s24 + $0x20] sm:$0xff]  ;;  %v283_v4 = vld [vmem:[%s768_s24 + $0x30] sm:$0xff]  ;;  %v280_v38 = vld [vmem:[%s768_s24 + $0x18] sm:$0xff] }
  0x18   : > { %v285_v5 = vld [vmem:[%s768_s24 + $0x40] sm:$0xff]  ;;  %v287_v6 = vld [vmem:[%s768_s24 + $0x50] sm:$0xff]  ;;  %v282_v39 = vld [vmem:[%s768_s24 + $0x28] sm:$0xff] }
  0x19   : > { %v289_v7 = vld [vmem:[%s768_s24 + $0x60] sm:$0xff]  ;;  %v291_v8 = vld [vmem:[%s768_s24 + $0x70] sm:$0xff]  ;;  %v284_v40 = vld [vmem:[%s768_s24 + $0x38] sm:$0xff] }
  0x1a   : > { %v293_v9 = vld [vmem:[%s773_s27] sm:$0xff]  ;;  %v295_v10 = vld [vmem:[%s773_s27 + $0x10] sm:$0xff]  ;;  %v286_v43 = vld [vmem:[%s768_s24 + $0x48] sm:$0xff] }
  0x1b   : > { %v297_v11 = vld [vmem:[%s773_s27 + $0x20] sm:$0xff]  ;;  %v299_v12 = vld [vmem:[%s773_s27 + $0x30] sm:$0xff]  ;;  %v309_v15 = vsub.f32 %v277_v1, %v293_v9  ;;  %v311_v16 = vsub.f32 %v279_v2, %v295_v10  ;;  %v288_v44 = vld [vmem:[%s768_s24 + $0x58] sm:$0xff] }
  0x1c   : > { %v301_v13 = vld [vmem:[%s773_s27 + $0x40] sm:$0xff]  ;;  %v303_v14 = vld [vmem:[%s773_s27 + $0x50] sm:$0xff]  ;;  %v313_v17 = vsub.f32 %v281_v3, %v297_v11  ;;  %v315_v20 = vsub.f32 %v283_v4, %v299_v12  ;;  %v290_v45 = vld [vmem:[%s768_s24 + $0x68] sm:$0xff] }
  0x1d   : > { %v305_v18 = vld [vmem:[%s773_s27 + $0x60] sm:$0xff]  ;;  %v307_v19 = vld [vmem:[%s773_s27 + $0x70] sm:$0xff]  ;;  %v317_v21 = vsub.f32 %v285_v5, %v301_v13  ;;  %v319_v22 = vsub.f32 %v287_v6, %v303_v14  ;;  %v325_v25 = vand.u32 2147483647, %v309_v15  ;;  %v327_v26 = vand.u32 2147483647, %v311_v16 }
  0x1e   : > { %v321_v23 = vsub.f32 %v289_v7, %v305_v18  ;;  %v323_v24 = vsub.f32 %v291_v8, %v307_v19  ;;  %v329_v27 = vand.u32 2147483647, %v313_v17  ;;  %v331_v28 = vand.u32 2147483647, %v315_v20  ;;  %v292_v50 = vld [vmem:[%s768_s24 + $0x78] sm:$0xff]  ;;  %v294_v51 = vld [vmem:[%s773_s27 + $0x8] sm:$0xff] }
  0x1f   : > { %v333_v29 = vand.u32 2147483647, %v317_v21  ;;  %v335_v31 = vand.u32 2147483647, %v319_v22  ;;  %v357_v34 = vcombine.low %v325_v25, %v327_v26  ;;  %v358_v36 = vcombine.high %v325_v25, %v327_v26  ;;  %v296_v52 = vld [vmem:[%s773_s27 + $0x18] sm:$0xff]  ;;  %v298_v53 = vld [vmem:[%s773_s27 + $0x28] sm:$0xff] }
  0x20   : > { %v337_v32 = vand.u32 2147483647, %v321_v23  ;;  %v339_v33 = vand.u32 2147483647, %v323_v24  ;;  %v361_v35 = vcombine.low %v329_v27, %v331_v28  ;;  %v362_v37 = vcombine.high %v329_v27, %v331_v28  ;;  %v300_v54 = vld [vmem:[%s773_s27 + $0x38] sm:$0xff]  ;;  %v302_v55 = vld [vmem:[%s773_s27 + $0x48] sm:$0xff] }
  0x21   : > { %v365_v41 = vcombine.low %v333_v29, %v335_v31  ;;  %v366_v42 = vcombine.high %v333_v29, %v335_v31  ;;  %v310_v56 = vsub.f32 %v278_v30, %v294_v51  ;;  %v312_v57 = vsub.f32 %v280_v38, %v296_v52  ;;  %v304_v60 = vld [vmem:[%s773_s27 + $0x58] sm:$0xff]  ;;  %v306_v61 = vld [vmem:[%s773_s27 + $0x68] sm:$0xff]  ;;  %v273_v1 = vld [vmem:[%s759_s20] sm:$0xff] }
  0x22   : > { %v369_v46 = vcombine.low %v337_v32, %v339_v33  ;;  %v389_v47 = vadd.f32 %v361_v35, %v357_v34  ;;  %v370_v48 = vcombine.high %v337_v32, %v339_v33  ;;  %v392_v49 = vadd.f32 %v362_v37, %v358_v36  ;;  %v308_v62 = vld [vmem:[%s773_s27 + $0x78] sm:$0xff]  ;;  %v274_v2 = vld [vmem:[%s759_s20 + $0x8] sm:$0xff]  ;;  %v275_v30 = vld [vmem:[%s759_s20 + $0x10] sm:$0xff] }
  0x23   : > { %v314_v63 = vsub.f32 %v282_v39, %v298_v53  ;;  %v316_v0 = vsub.f32 %v284_v40, %v300_v54  ;;  %v318_v3 = vsub.f32 %v286_v43, %v302_v55  ;;  %v320_v4 = vsub.f32 %v288_v44, %v304_v60  ;;  %v276_v33 = vld [vmem:[%s759_s20 + $0x18] sm:$0xff] }
  0x24   : > { %v390_v58 = vadd.f32 %v389_v47, %v365_v41  ;;  %v393_v59 = vadd.f32 %v392_v49, %v366_v42  ;;  %v322_v5 = vsub.f32 %v290_v45, %v306_v61  ;;  %v324_v6 = vsub.f32 %v292_v50, %v308_v62 }
  0x25   : > { %v326_v9 = vand.u32 2147483647, %v310_v56  ;;  %v328_v10 = vand.u32 2147483647, %v312_v57  ;;  %v330_v11 = vand.u32 2147483647, %v314_v63 }
  0x26   : > { %v391_v7 = vadd.f32 %v390_v58, %v369_v46  ;;  %v394_v8 = vadd.f32 %v393_v59, %v370_v48  ;;  %v332_v12 = vand.u32 2147483647, %v316_v0  ;;  %v334_v13 = vand.u32 2147483647, %v318_v3 }
  0x27   : > { %v336_v16 = vand.u32 2147483647, %v320_v4  ;;  %v338_v17 = vand.u32 2147483647, %v322_v5  ;;  %v340_v18 = vand.u32 2147483647, %v324_v6  ;;  %v359_v19 = vcombine.low %v326_v9, %v328_v10 }
  0x28   : > { %v401_v14 = vadd.f32 %v391_v7, %v273_v1  ;;  %v402_v15 = vadd.f32 %v394_v8, %v274_v2  ;;  %v363_v20 = vcombine.low %v330_v11, %v332_v12  ;;  %v360_v21 = vcombine.high %v326_v9, %v328_v10 }
  0x29   : > { %v367_v22 = vcombine.low %v334_v13, %v336_v16  ;;  %v364_v23 = vcombine.high %v330_v11, %v332_v12  ;;  %v368_v24 = vcombine.high %v334_v13, %v336_v16  ;;  %v371_v25 = vcombine.low %v338_v17, %v340_v18 }
  0x2a   : > { %405 = vst [vmem:[%s759_s20] sm:$0xff] %v401_v14  ;;  %406 = vst [vmem:[%s759_s20 + $0x8] sm:$0xff] %v402_v15  ;;  %v395_v26 = vadd.f32 %v363_v20, %v359_v19  ;;  %v372_v27 = vcombine.high %v338_v17, %v340_v18 }
  0x2b   : > { %v398_v28 = vadd.f32 %v364_v23, %v360_v21 }
  0x2c   : > { %v396_v29 = vadd.f32 %v395_v26, %v367_v22 }
  0x2d   : > { %v399_v31 = vadd.f32 %v398_v28, %v368_v24 }
  0x2e   : > { %v397_v32 = vadd.f32 %v396_v29, %v371_v25 }
  0x2f   : > { %v400_v34 = vadd.f32 %v399_v31, %v372_v27 }
  0x30   : > { %v403_v35 = vadd.f32 %v397_v32, %v275_v30 }
  0x31   : > { %v404_v36 = vadd.f32 %v400_v34, %v276_v33 }
  0x32   : > { %407 = vst [vmem:[%s759_s20 + $0x10] sm:$0xff] %v403_v35 }
  0x33   : > { %408 = vst [vmem:[%s759_s20 + $0x18] sm:$0xff] %v404_v36 }
  0x34 PF: > { %p665_p8 = scmp.ge.s32.totalorder %s754_s16, 32 }
  0x35   : > { %v417_v37 = vld [vmem:[%s768_s24] sm:$0xff] (!%p665_p8)  ;;  %v419_v38 = vld [vmem:[%s768_s24 + $0x10] sm:$0xff] (!%p665_p8)  ;;  %v481_v39 = vlaneseq (!%p665_p8)  ;;  %v831_v50 = vstv (!%p665_p8), %s754_s16  ;;  %v418_v13 = vld [vmem:[%s768_s24 + $0x8] sm:$0xff] (!%p665_p8) }
  0x36   : > { %412 = sbr.rel (%p665_p8) target bundleno = 86 (0x56), region = 40  ;;  %v421_v40 = vld [vmem:[%s768_s24 + $0x20] sm:$0xff] (!%p665_p8)  ;;  %v423_v41 = vld [vmem:[%s768_s24 + $0x30] sm:$0xff] (!%p665_p8)  ;;  %v420_v14 = vld [vmem:[%s768_s24 + $0x18] sm:$0xff] (!%p665_p8) }
  0x37   : > { %v425_v42 = vld [vmem:[%s768_s24 + $0x40] sm:$0xff] (!%p665_p8)  ;;  %v427_v43 = vld [vmem:[%s768_s24 + $0x50] sm:$0xff] (!%p665_p8)  ;;  %v825_v46 = vshrl.u32 (!%p665_p8), %v481_v39, 7  ;;  %v422_v19 = vld [vmem:[%s768_s24 + $0x28] sm:$0xff] (!%p665_p8) }
  0x38   : > { %v429_v44 = vld [vmem:[%s768_s24 + $0x60] sm:$0xff] (!%p665_p8)  ;;  %v431_v45 = vld [vmem:[%s768_s24 + $0x70] sm:$0xff] (!%p665_p8)  ;;  %v424_v20 = vld [vmem:[%s768_s24 + $0x38] sm:$0xff] (!%p665_p8) }
  0x39   : > { %v433_v47 = vld [vmem:[%s773_s27] sm:$0xff] (!%p665_p8)  ;;  %v435_v48 = vld [vmem:[%s773_s27 + $0x10] sm:$0xff] (!%p665_p8)  ;;  %v837_v57 = vadd.s32 (!%p665_p8), 8, %v825_v46  ;;  %v842_v63 = vadd.s32 (!%p665_p8), 16, %v825_v46  ;;  %vm487_vm0 = vcmp.lt.s32.totalorder (!%p665_p8), %v825_v46, %v831_v50  ;;  %v849_v10 = vadd.s32 (!%p665_p8), 24, %v825_v46  ;;  %v426_v21 = vld [vmem:[%s768_s24 + $0x48] sm:$0xff] (!%p665_p8) }
  0x3a   : > { %v437_v49 = vld [vmem:[%s773_s27 + $0x20] sm:$0xff] (!%p665_p8)  ;;  %v439_v51 = vld [vmem:[%s773_s27 + $0x30] sm:$0xff] (!%p665_p8)  ;;  %v449_v54 = vsub.f32 (!%p665_p8), %v417_v37, %v433_v47  ;;  %v451_v55 = vsub.f32 (!%p665_p8), %v419_v38, %v435_v48  ;;  %v428_v22 = vld [vmem:[%s768_s24 + $0x58] sm:$0xff] (!%p665_p8) }
  0x3b   : > { %v441_v52 = vld [vmem:[%s773_s27 + $0x40] sm:$0xff] (!%p665_p8)  ;;  %v443_v53 = vld [vmem:[%s773_s27 + $0x50] sm:$0xff] (!%p665_p8)  ;;  %v453_v56 = vsub.f32 (!%p665_p8), %v421_v40, %v437_v49  ;;  %v455_v60 = vsub.f32 (!%p665_p8), %v423_v41, %v439_v51  ;;  %vm488_vm1 = vcmp.lt.s32.totalorder (!%p665_p8), %v837_v57, %v831_v50  ;;  %vm489_vm2 = vcmp.lt.s32.totalorder (!%p665_p8), %v842_v63, %v831_v50  ;;  %v430_v26 = vld [vmem:[%s768_s24 + $0x68] sm:$0xff] (!%p665_p8) }
  0x3c   : > { %v445_v58 = vld [vmem:[%s773_s27 + $0x60] sm:$0xff] (!%p665_p8)  ;;  %v447_v59 = vld [vmem:[%s773_s27 + $0x70] sm:$0xff] (!%p665_p8)  ;;  %v457_v61 = vsub.f32 (!%p665_p8), %v425_v42, %v441_v52  ;;  %v459_v62 = vsub.f32 (!%p665_p8), %v427_v43, %v443_v53  ;;  %v465_v2 = vand.u32 (!%p665_p8), 2147483647, %v449_v54  ;;  %v467_v3 = vand.u32 (!%p665_p8), 2147483647, %v451_v55 }
  0x3d   : > { %v461_v0 = vsub.f32 %v429_v44, %v445_v58  ;;  %v463_v1 = vsub.f32 %v431_v45, %v447_v59  ;;  %v469_v4 = vand.u32 2147483647, %v453_v56  ;;  %v471_v5 = vand.u32 2147483647, %v455_v60  ;;  %v432_v27 = vld [vmem:[%s768_s24 + $0x78] sm:$0xff]  ;;  %v434_v28 = vld [vmem:[%s773_s27 + $0x8] sm:$0xff] }
  0x3e   : > { %v473_v6 = vand.u32 2147483647, %v457_v61  ;;  %v475_v7 = vand.u32 2147483647, %v459_v62  ;;  %v507_v11 = vcombine.low %v465_v2, %v467_v3  ;;  %v508_v17 = vcombine.high %v465_v2, %v467_v3  ;;  %v436_v29 = vld [vmem:[%s773_s27 + $0x18] sm:$0xff]  ;;  %v438_v34 = vld [vmem:[%s773_s27 + $0x28] sm:$0xff] }
  0x3f   : > { %v477_v8 = vand.u32 2147483647, %v461_v0  ;;  %v479_v9 = vand.u32 2147483647, %v463_v1  ;;  %v511_v12 = vcombine.low %v469_v4, %v471_v5  ;;  %v512_v18 = vcombine.high %v469_v4, %v471_v5  ;;  %v440_v35 = vld [vmem:[%s773_s27 + $0x38] sm:$0xff]  ;;  %v442_v36 = vld [vmem:[%s773_s27 + $0x48] sm:$0xff] }
  0x40   : > { %v515_v15 = vcombine.low %v473_v6, %v475_v7  ;;  %vm490_vm3 = vcmp.lt.s32.totalorder %v849_v10, %v831_v50  ;;  %v539_v23 = vsel %vm487_vm0, %v507_v11, 0.0  ;;  %v516_v25 = vcombine.high %v473_v6, %v475_v7  ;;  %v444_v40 = vld [vmem:[%s773_s27 + $0x58] sm:$0xff]  ;;  %v446_v41 = vld [vmem:[%s773_s27 + $0x68] sm:$0xff]  ;;  %v413_v49 = vld [vmem:[%s759_s20] sm:$0xff] }
  0x41   : > { %v519_v16 = vcombine.low %v477_v8, %v479_v9  ;;  %v543_v24 = vsel %vm488_vm1, %v511_v12, 0.0  ;;  %v520_v33 = vcombine.high %v477_v8, %v479_v9  ;;  %v540_v37 = vsel %vm487_vm0, %v508_v17, 0.0  ;;  %v448_v42 = vld [vmem:[%s773_s27 + $0x78] sm:$0xff]  ;;  %v414_v56 = vld [vmem:[%s759_s20 + $0x8] sm:$0xff] }
  0x42   : > { %v547_v30 = vsel %vm489_vm2, %v515_v15, 0.0  ;;  %v555_v32 = vadd.f32 %v543_v24, %v539_v23  ;;  %v544_v38 = vsel %vm488_vm1, %v512_v18, 0.0  ;;  %v548_v39 = vsel %vm489_vm2, %v516_v25, 0.0 }
  0x43   : > { %v551_v31 = vsel %vm490_vm3, %v519_v16, 0.0  ;;  %v450_v43 = vsub.f32 %v418_v13, %v434_v28  ;;  %v552_v45 = vsel %vm490_vm3, %v520_v33, 0.0  ;;  %v558_v47 = vadd.f32 %v544_v38, %v540_v37 }
  0x44   : > { %v556_v44 = vadd.f32 %v555_v32, %v547_v30  ;;  %v452_v48 = vsub.f32 %v420_v14, %v436_v29  ;;  %v454_v51 = vsub.f32 %v422_v19, %v438_v34  ;;  %v456_v52 = vsub.f32 %v424_v20, %v440_v35  ;;  %v416_v30 = vld [vmem:[%s759_s20 + $0x18] sm:$0xff] }
  0x45   : > { %v458_v53 = vsub.f32 %v426_v21, %v442_v36  ;;  %v460_v54 = vsub.f32 %v428_v22, %v444_v40  ;;  %v559_v58 = vadd.f32 %v558_v47, %v548_v39  ;;  %v462_v59 = vsub.f32 %v430_v26, %v446_v41 }
  0x46   : > { %v557_v55 = vadd.f32 %v556_v44, %v551_v31  ;;  %v464_v60 = vsub.f32 %v432_v27, %v448_v42  ;;  %v466_v61 = vand.u32 2147483647, %v450_v43  ;;  %v468_v62 = vand.u32 2147483647, %v452_v48  ;;  %v415_v27 = vld [vmem:[%s759_s20 + $0x10] sm:$0xff] }
  0x47   : > { %v470_v0 = vand.u32 2147483647, %v454_v51  ;;  %v560_v2 = vadd.f32 %v559_v58, %v552_v45  ;;  %v472_v3 = vand.u32 2147483647, %v456_v52  ;;  %v474_v4 = vand.u32 2147483647, %v458_v53 }
  0x48   : > { %v567_v1 = vadd.f32 %v557_v55, %v413_v49  ;;  %v476_v5 = vand.u32 2147483647, %v460_v54  ;;  %v478_v6 = vand.u32 2147483647, %v462_v59  ;;  %v480_v7 = vand.u32 2147483647, %v464_v60 }
  0x49   : > { %v509_v8 = vcombine.low %v466_v61, %v468_v62  ;;  %v568_v9 = vadd.f32 %v560_v2, %v414_v56  ;;  %v513_v11 = vcombine.low %v470_v0, %v472_v3  ;;  %v510_v12 = vcombine.high %v466_v61, %v468_v62 }
  0x4a   : > { %571 = vst [vmem:[%s759_s20] sm:$0xff] %v567_v1  ;;  %v514_v13 = vcombine.high %v470_v0, %v472_v3  ;;  %v517_v14 = vcombine.low %v474_v4, %v476_v5  ;;  %v521_v15 = vcombine.low %v478_v6, %v480_v7  ;;  %v518_v17 = vcombine.high %v474_v4, %v476_v5 }
  0x4b   : > { %v541_v16 = vsel %vm487_vm0, %v509_v8, 0.0  ;;  %572 = vst [vmem:[%s759_s20 + $0x8] sm:$0xff] %v568_v9  ;;  %v545_v18 = vsel %vm488_vm1, %v513_v11, 0.0  ;;  %v522_v19 = vcombine.high %v478_v6, %v480_v7  ;;  %v542_v20 = vsel %vm487_vm0, %v510_v12, 0.0 }
  0x4c   : > { %v546_v21 = vsel %vm488_vm1, %v514_v13, 0.0  ;;  %v549_v22 = vsel %vm489_vm2, %v517_v14, 0.0  ;;  %v561_v23 = vadd.f32 %v545_v18, %v541_v16  ;;  %v550_v24 = vsel %vm489_vm2, %v518_v17, 0.0 }
  0x4d   : > { %v553_v46 = vsel %vm490_vm3, %v521_v15, 0.0  ;;  %v564_v25 = vadd.f32 %v546_v21, %v542_v20  ;;  %v554_v57 = vsel %vm490_vm3, %v522_v19, 0.0 }
  0x4e   : > { %v562_v26 = vadd.f32 %v561_v23, %v549_v22 }
  0x4f   : > { %v565_v28 = vadd.f32 %v564_v25, %v550_v24 }
  0x50   : > { %v563_v29 = vadd.f32 %v562_v26, %v553_v46 }
  0x51   : > { %v566_v31 = vadd.f32 %v565_v28, %v554_v57 }
  0x52   : > { %v569_v32 = vadd.f32 %v563_v29, %v415_v27 }
  0x53   : > { %v570_v33 = vadd.f32 %v566_v31, %v416_v30 }
  0x54   : > { %573 = vst [vmem:[%s759_s20 + $0x10] sm:$0xff] %v569_v32 }
  0x55   : > { %574 = vst [vmem:[%s759_s20 + $0x18] sm:$0xff] %v570_v33 }
  0x56 PF: > { %s12_s11 = sadd.s32 1, %s718_s11   ;;  %s939_s9 = smov %s714_s10 }
  0x57   : > { %p9_p9 = scmp.ge.s32.totalorder %s12_s11, 4   ;;  %s940_s10 = smov %s942_s12 }
  0x59   :  { %11 = sbr.rel (!%p9_p9) target bundleno = 2 (0x2), region = 73 }

</bundles_post_ra>
